<compile_context>
chip_gen: v6e
topology: v6e:2x2x1
jax: 0.10.0
libtpu: 0.0.40
codegen_flags: <defaults>
</compile_context>

<pallas_src>
import functools

import jax
import jax.numpy as jnp
from jax.experimental import pallas as pl
from jax.experimental.pallas import tpu as pltpu


def _bn_relu_kernel(x_ref, scale_ref, shift_ref, o_ref):
    # x_ref: (tile_rows, H*W); scale/shift: (tile_rows, 1) -> lane broadcast.
    y = x_ref[...] * scale_ref[...] + shift_ref[...]
    o_ref[...] = jnp.maximum(y, jnp.zeros((), y.dtype)).astype(o_ref.dtype)


def _choose_tile_rows(rows, hw, itemsize, target_bytes=2 * 1024 * 1024):
    """Largest divisor of `rows` whose (tile_rows, hw) slab stays ~under target_bytes.

    Always returns a divisor of rows, so no padding copy is ever needed.
    """
    cap = int(max(1, target_bytes // max(1, hw * itemsize)))
    if rows <= cap:
        return rows
    # Prefer a multiple-of-8 divisor (sublane aligned), largest <= cap.
    t = (cap // 8) * 8
    while t >= 8:
        if rows % t == 0:
            return t
        t -= 8
    # Fallback: any divisor <= cap (rare: rows = N*C is almost always 8-aligned).
    for t in range(cap, 0, -1):
        if rows % t == 0:
            return t
    return 1


def fused_bn_relu(x_nchw, weight, bias, running_mean, running_var, eps=1e-5):
    """x_nchw: (N, C, H, W).  Returns (N, C, H, W) with BN(inference)+ReLU applied."""
    N, C, H, W = x_nchw.shape
    HW = H * W
    rows = N * C

    # Zero-copy view: (N, C, H, W) -> (N*C, H*W); H*W maps to the fast lane axis.
    x2d = x_nchw.reshape(rows, HW)

    # Fold BN affine once in the wrapper (tiny C-length op), in f32 for accuracy.
    inv_std = jax.lax.rsqrt(running_var.astype(jnp.float32) + jnp.float32(eps))
    scale_c = weight.astype(jnp.float32) * inv_std
    shift_c = bias.astype(jnp.float32) - running_mean.astype(jnp.float32) * scale_c
    # Per-(n, c) row parameters: (N*C, 1) column vectors (N*C*4 bytes each).
    scale = jnp.tile(scale_c, N).reshape(rows, 1)
    shift = jnp.tile(shift_c, N).reshape(rows, 1)

    tile_rows = _choose_tile_rows(rows, HW, x_nchw.dtype.itemsize)
    grid = (rows // tile_rows,)

    x_spec = pl.BlockSpec((tile_rows, HW), lambda i: (i, 0))
    p_spec = pl.BlockSpec((tile_rows, 1), lambda i: (i, 0))

    out2d = pl.pallas_call(
        _bn_relu_kernel,
        out_shape=jax.ShapeDtypeStruct((rows, HW), x_nchw.dtype),
        grid_spec=pltpu.PrefetchScalarGridSpec(
            num_scalar_prefetch=0,
            grid=grid,
            in_specs=[x_spec, p_spec, p_spec],
            out_specs=pl.BlockSpec((tile_rows, HW), lambda i: (i, 0)),
        ),
        compiler_params=pltpu.CompilerParams(
            dimension_semantics=("parallel",),
            vmem_limit_bytes=32 * 1024 * 1024,
        ),
    )(x2d, scale, shift)

    # Zero-copy view back: (N*C, H*W) -> (N, C, H, W).
    return out2d.reshape(N, C, H, W)

# TODO(synk): for best end-to-end perf this BN+ReLU should be fused into the
# producing conv/matmul Pallas epilogue; as a standalone pass it is bounded by
# one HBM read + one HBM write of the activation tensor.


if __name__ == "__main__":
    key = jax.random.PRNGKey(0)
    kx, kw, kb, km, kv = jax.random.split(key, 5)

    N, C, H, W = 2, 4, 16, 16
    eps = 1e-5

    x = jax.random.normal(kx, (N, C, H, W), dtype=jnp.float32)
    weight = jax.random.normal(kw, (C,), dtype=jnp.float32)
    bias = jax.random.normal(kb, (C,), dtype=jnp.float32)
    running_mean = jax.random.normal(km, (C,), dtype=jnp.float32)
    running_var = jax.random.uniform(kv, (C,), dtype=jnp.float32,
                                     minval=0.5, maxval=2.0)

    out = fused_bn_relu(x, weight, bias, running_mean, running_var, eps)
    out = jax.block_until_ready(out)

    # Pure-JAX reference check (PyTorch eval-mode BN + ReLU).
    inv_std = 1.0 / jnp.sqrt(running_var + eps)
    ref = (x - running_mean[None, :, None, None]) * inv_std[None, :, None, None]
    ref = ref * weight[None, :, None, None] + bias[None, :, None, None]
    ref = jnp.maximum(ref, 0.0)
    assert out.shape == (N, C, H, W)
    assert jnp.allclose(out, ref, atol=1e-5, rtol=1e-5)

    print("KERNEL_OK")
</pallas_src>

<mosaic_0001>
module attributes {stable_mosaic.version = 11 : i64} {
  func.func @_bn_relu_kernel(%arg0: i32, %arg1: memref<8x256xf32, #tpu.memory_space<vmem>>, %arg2: memref<8x1xf32, #tpu.memory_space<vmem>>, %arg3: memref<8x1xf32, #tpu.memory_space<vmem>>, %arg4: memref<8x256xf32, #tpu.memory_space<vmem>>) attributes {dimension_semantics = [#tpu.dimension_semantics<parallel>], iteration_bounds = array<i64: 1>, scalar_prefetch = 0 : i64, scratch_operands = 0 : i64, tpu.core_type = #tpu.core_type<tc>, window_params = [{transform_indices = @transform_0, window_bounds = array<i64: 8, 256>}, {transform_indices = @transform_1, window_bounds = array<i64: 8, 1>}, {transform_indices = @transform_2, window_bounds = array<i64: 8, 1>}, {transform_indices = @transform_3, window_bounds = array<i64: 8, 256>}]} {
    %c0 = arith.constant 0 : index
    %c0_0 = arith.constant 0 : index
    %0 = vector.load %arg1[%c0, %c0_0] : memref<8x256xf32, #tpu.memory_space<vmem>>, vector<8x256xf32>
    %c0_1 = arith.constant 0 : index
    %c0_2 = arith.constant 0 : index
    %1 = vector.load %arg2[%c0_1, %c0_2] : memref<8x1xf32, #tpu.memory_space<vmem>>, vector<8x1xf32>
    %2 = vector.broadcast %1 : vector<8x1xf32> to vector<8x256xf32>
    %3 = arith.mulf %0, %2 : vector<8x256xf32>
    %c0_3 = arith.constant 0 : index
    %c0_4 = arith.constant 0 : index
    %4 = vector.load %arg3[%c0_3, %c0_4] : memref<8x1xf32, #tpu.memory_space<vmem>>, vector<8x1xf32>
    %5 = vector.broadcast %4 : vector<8x1xf32> to vector<8x256xf32>
    %6 = arith.addf %3, %5 : vector<8x256xf32>
    %cst = arith.constant 0.000000e+00 : f32
    %7 = vector.broadcast %cst : f32 to vector<8x256xf32>
    %8 = arith.maximumf %6, %7 : vector<8x256xf32>
    %c0_5 = arith.constant 0 : index
    %c0_6 = arith.constant 0 : index
    %9 = vector.load %arg4[%c0_5, %c0_6] : memref<8x256xf32, #tpu.memory_space<vmem>>, vector<8x256xf32>
    tpu.vector_store %arg4[%c0_5, %c0_6], %8 {strides = array<i32>} : memref<8x256xf32, #tpu.memory_space<vmem>>, vector<8x256xf32>,
    return
  }
  func.func @transform_0(%arg0: i32) -> (i32, i32) {
    %c0_i32 = arith.constant 0 : i32
    %c0_i32_0 = arith.constant 0 : i32
    return %arg0, %c0_i32 : i32, i32
  }
  func.func @transform_1(%arg0: i32) -> (i32, i32) {
    %c0_i32 = arith.constant 0 : i32
    %c0_i32_0 = arith.constant 0 : i32
    return %arg0, %c0_i32 : i32, i32
  }
  func.func @transform_2(%arg0: i32) -> (i32, i32) {
    %c0_i32 = arith.constant 0 : i32
    %c0_i32_0 = arith.constant 0 : i32
    return %arg0, %c0_i32 : i32, i32
  }
  func.func @transform_3(%arg0: i32) -> (i32, i32) {
    %c0_i32 = arith.constant 0 : i32
    %c0_i32_0 = arith.constant 0 : i32
    return %arg0, %c0_i32 : i32, i32
  }
}

</mosaic_0001>

<bundles_post_ra>
// kernel: tpu_custom_call.1
= control target key start
LH: loop header
LB: loop body
LE: loop exit
PB: predicated region body
PF: predicated region fallthrough
CT: control target
= control target key end

     0   :  { %v76_v1 = vmov 0   ;;  %s113_s0 = inlined_call_operand.vmem [shape: f32[8,256], index: 0, kind: input, shape index: {}]   ;;  %s114_s1 = inlined_call_operand.vmem [shape: f32[8,1], index: 1, kind: input, shape index: {}]   ;;  %s115_s2 = inlined_call_operand.vmem [shape: f32[8,1], index: 2, kind: input, shape index: {}]   ;;  %s116_s3 = inlined_call_operand.hbm [shape: f32[8,256], index: 3, kind: output, shape index: {}]  }
   0x1   :  { %v17_v0 = vld [vmem:[%s114_s1] sm:$0xff]  ;;  %53 = vset.pattern.permute.xlu0 %v76_v1 }
   0x2   :  { %8 = vsyncpa [#allocation3], 0  ;;  %20 = vperm.xlu0 %53, %v17_v0   ;;  %v25_v2 = vld [vmem:[%s115_s2] sm:$0xff]  ;;  %v16_v5 = vld [vmem:[%s113_s0 + $0x8] sm:$0xff]  ;;  %s77_s1 = smov [#allocation2]  }
   0x3   :  { %v15_v4 = vld [vmem:[%s113_s0] sm:$0xff]  ;;  %s43_s20 = sshll.u32 %s77_s1, 4  ;;  %s44_s20 = int_to_ptr.vmem [resolvable:$true] %s43_s20 }
   0x4   :  { %s54_s2 = scalar_lea.vmem %s44_s20, 256  ;;  %p59_p1 = scmp.lt.s32.totalorder %s44_s20, %s44_s20 }
   0x5   :  { %p55_p0 = scmp.ne.s32.totalorder %s44_s20, %s54_s2  ;;  %p60_p2 = scmp.lt.s32.totalorder %s54_s2, %s54_s2 }
   0x6   :  { %28 = vperm.xlu0 %53, %v25_v2  }
   0x7   :  { %p61_p3 = por %p60_p2, %p59_p1 }
   0x9   :  { %p62_p4 = pnand %p61_p3, %p55_p0 }
  0x7d   :  { %v21_v3 = vpop.permute.xlu0 %20 }
  0x7e   :  { %v23_v6 = vmul.f32 %v21_v3, %v15_v4  ;;  %v24_v7 = vmul.f32 %v21_v3, %v16_v5 }
  0x81   :  { %v29_v8 = vpop.permute.xlu0 %28 }
  0x82   :  { %v31_v9 = vadd.f32 %v29_v8, %v23_v6  ;;  %v32_v10 = vadd.f32 %v29_v8, %v24_v7 }
  0x84   :  { %v33_v11 = vmax.f32 %v31_v9, 0.0  ;;  %v34_v12 = vmax.f32 %v32_v10, 0.0 }
  0x86   :  { %35 = vst [vmem:[#allocation2] sm:$0xff] %v33_v11  ;;  %36 = vst [vmem:[#allocation2 + $0x8] sm:$0xff] %v34_v12 }
  0x87   :  { %65 = shalt.err (!%p62_p4)
}
  0x88   :  { %46 = dma.vmem_to_hbm [thread:$0]  %s44_s20, 256, %s116_s3, [#allocation3]  }
  0x89   :  { %74 = dma.done.wait [#allocation3], 256  }
  0x8a   :  { %75 = vsyncadd [#allocation3], 4294967040 }
  0x8b   :  { %50 = vsyncpa [#allocation3], 1 }

</bundles_post_ra>
